<compile_context>
chip_gen: v7x
topology: tpu7x:2x2x1
jax: 0.10.0
libtpu: 0.0.40
codegen_flags: <defaults>
</compile_context>

<pallas_src>
import jax
import jax.numpy as jnp
from jax.experimental import pallas as pl
from jax.experimental.pallas import tpu as pltpu

LANE = 128
SUBLANE = 8
TILE_B_CAP = 1024  # per-step VMEM footprint stays far below scoped limits


def _round_up(n: int, m: int) -> int:
    return ((n + m - 1) // m) * m


def mlp_kernel(x_ref, w1_ref, b1_ref, w2_ref, b2_ref, w3_ref, b3_ref, o_ref):
    # x: (tile_b, in), w*: (in, out) pre-transposed, b*: (1, out).
    x = x_ref[...]

    h1 = jnp.dot(x, w1_ref[...], preferred_element_type=jnp.float32) + b1_ref[...]
    h1 = jnp.tanh(h1)

    h2 = jnp.dot(h1, w2_ref[...], preferred_element_type=jnp.float32) + b2_ref[...]
    h2 = jax.nn.sigmoid(h2)

    h3 = jnp.dot(h2, w3_ref[...], preferred_element_type=jnp.float32) + b3_ref[...]
    o_ref[...] = h3.astype(o_ref.dtype)


def prepare_params(w1, b1, w2, b2, w3, b3):
    """One-time parameter prep (call at load time, NOT per forward).

    PyTorch nn.Linear stores W as [out, in]; we transpose to [in, out] so the
    kernel does plain x @ W on the MXU.  The hidden dimension is zero-padded to
    a multiple of 128 lanes (exact: padded hidden columns only ever multiply
    zero rows of the next weight).  The output dimension is left unpadded so
    the kernel writes only useful bytes to HBM.
    """
    in_size = int(w1.shape[1])
    hidden = int(w1.shape[0])
    out_size = int(w3.shape[0])
    hid_pad = _round_up(hidden, LANE)

    w1t = jnp.zeros((in_size, hid_pad), w1.dtype).at[:, :hidden].set(w1.T)
    b1p = jnp.zeros((1, hid_pad), b1.dtype).at[0, :hidden].set(b1)

    w2t = jnp.zeros((hid_pad, hid_pad), w2.dtype).at[:hidden, :hidden].set(w2.T)
    b2p = jnp.zeros((1, hid_pad), b2.dtype).at[0, :hidden].set(b2)

    # Padded contraction rows of w3t stay zero -> sigmoid(0)=0.5 in padded h2
    # columns contributes nothing.
    w3t = jnp.zeros((hid_pad, out_size), w3.dtype).at[:hidden, :].set(w3.T)
    b3p = b3[None, :]

    params = (w1t, b1p, w2t, b2p, w3t, b3p)
    return params, out_size


def dummy_model_forward(x, params, out_size):
    """x: [B, input_size]; params from prepare_params(); returns [B, out_size]."""
    w1t, b1, w2t, b2, w3t, b3 = params
    B, in_size = x.shape

    # Adaptive batch tiling:
    #  - at least 2 grid steps once B >= 16 (so v7x's second TC gets work),
    #  - tiles capped at TILE_B_CAP to amortize per-step overhead,
    #  - tile_b = round_up(ceil(B / n_tiles), 8) bounds padding waste to <8
    #    rows per tile (vs up to ~2x with round_up(B, tile_b)).
    n_tiles = max(pl.cdiv(B, TILE_B_CAP), 2 if B >= 2 * SUBLANE else 1)
    tile_b = _round_up(pl.cdiv(B, n_tiles), SUBLANE)
    b_pad = n_tiles * tile_b
    if b_pad != B:
        x = jnp.pad(x, ((0, b_pad - B), (0, 0)))

    resident = lambda a: pl.BlockSpec(a.shape, lambda i: (0, 0))  # stays in VMEM

    out = pl.pallas_call(
        mlp_kernel,
        out_shape=jax.ShapeDtypeStruct((b_pad, out_size), x.dtype),
        grid=(n_tiles,),
        in_specs=[
            pl.BlockSpec((tile_b, in_size), lambda i: (i, 0)),
            resident(w1t), resident(b1),
            resident(w2t), resident(b2),
            resident(w3t), resident(b3),
        ],
        # Unpadded output block: last dim == full array dim, so it is legal;
        # HBM writeback carries only the useful out_size lanes.
        out_specs=pl.BlockSpec((tile_b, out_size), lambda i: (i, 0)),
        compiler_params=pltpu.CompilerParams(
            dimension_semantics=("parallel",),  # shard batch tiles across TCs
        ),
    )(x, w1t, b1, w2t, b2, w3t, b3)

    # Padded batch rows produce garbage (they flow through sigmoid(b2)); keep
    # this slice if the layout ever changes.
    return out[:B]


def reference_forward(x, w1, b1, w2, b2, w3, b3):
    h = jnp.tanh(x @ w1.T + b1)
    h = jax.nn.sigmoid(h @ w2.T + b2)
    return h @ w3.T + b3


if __name__ == "__main__":
    input_size, inner_size, output_size = 32, 64, 16
    batch = 8

    key = jax.random.PRNGKey(0)
    kx, k1, k2, k3, kb1, kb2, kb3 = jax.random.split(key, 7)

    x = jax.random.normal(kx, (batch, input_size), dtype=jnp.float32)

    # Deterministic init (Kaiming-uniform-ish scale, like nn.Linear defaults).
    def init_w(k, out_f, in_f):
        bound = 1.0 / jnp.sqrt(in_f)
        return jax.random.uniform(k, (out_f, in_f), jnp.float32, -bound, bound)

    def init_b(k, out_f, in_f):
        bound = 1.0 / jnp.sqrt(in_f)
        return jax.random.uniform(k, (out_f,), jnp.float32, -bound, bound)

    w1 = init_w(k1, inner_size, input_size)
    b1 = init_b(kb1, inner_size, input_size)
    w2 = init_w(k2, inner_size, inner_size)
    b2 = init_b(kb2, inner_size, inner_size)
    w3 = init_w(k3, output_size, inner_size)
    b3 = init_b(kb3, output_size, inner_size)

    # One-time param prep (transposes / hidden-dim padding hoisted out of the
    # per-forward call path).
    params, out_size = prepare_params(w1, b1, w2, b2, w3, b3)
    params = jax.block_until_ready(params)

    out = dummy_model_forward(x, params, out_size)
    out = jax.block_until_ready(out)

    ref = reference_forward(x, w1, b1, w2, b2, w3, b3)
    assert out.shape == (batch, output_size)
    assert jnp.allclose(out, ref, atol=1e-5, rtol=1e-5)

    # Also exercise a larger, non-tile-aligned batch (multi-step parallel grid,
    # ragged padding path).
    xb = jax.random.normal(kx, (264, input_size), dtype=jnp.float32)
    outb = jax.block_until_ready(dummy_model_forward(xb, params, out_size))
    refb = reference_forward(xb, w1, b1, w2, b2, w3, b3)
    assert outb.shape == (264, output_size)
    assert jnp.allclose(outb, refb, atol=1e-5, rtol=1e-5)

    print("KERNEL_OK")
</pallas_src>

<mosaic_0001>
module attributes {stable_mosaic.version = 11 : i64} {
  func.func @mlp_kernel(%arg0: i32, %arg1: memref<8x32xf32, #tpu.memory_space<vmem>>, %arg2: memref<32x128xf32, #tpu.memory_space<vmem>>, %arg3: memref<1x128xf32, #tpu.memory_space<vmem>>, %arg4: memref<128x128xf32, #tpu.memory_space<vmem>>, %arg5: memref<1x128xf32, #tpu.memory_space<vmem>>, %arg6: memref<128x16xf32, #tpu.memory_space<vmem>>, %arg7: memref<1x16xf32, #tpu.memory_space<vmem>>, %arg8: memref<8x16xf32, #tpu.memory_space<vmem>>) attributes {dimension_semantics = [#tpu.dimension_semantics<parallel>], iteration_bounds = array<i64: 1>, scalar_prefetch = 0 : i64, scratch_operands = 0 : i64, tpu.core_type = #tpu.core_type<tc>, window_params = [{transform_indices = @transform_0, window_bounds = array<i64: 8, 32>}, {pipeline_mode = #tpu.pipeline_mode<synchronous>, transform_indices = @transform_1, window_bounds = array<i64: 32, 128>}, {pipeline_mode = #tpu.pipeline_mode<synchronous>, transform_indices = @transform_2, window_bounds = array<i64: 1, 128>}, {pipeline_mode = #tpu.pipeline_mode<synchronous>, transform_indices = @transform_3, window_bounds = array<i64: 128, 128>}, {pipeline_mode = #tpu.pipeline_mode<synchronous>, transform_indices = @transform_4, window_bounds = array<i64: 1, 128>}, {pipeline_mode = #tpu.pipeline_mode<synchronous>, transform_indices = @transform_5, window_bounds = array<i64: 128, 16>}, {pipeline_mode = #tpu.pipeline_mode<synchronous>, transform_indices = @transform_6, window_bounds = array<i64: 1, 16>}, {transform_indices = @transform_7, window_bounds = array<i64: 8, 16>}]} {
    %c0 = arith.constant 0 : index
    %c0_0 = arith.constant 0 : index
    %0 = vector.load %arg1[%c0, %c0_0] : memref<8x32xf32, #tpu.memory_space<vmem>>, vector<8x32xf32>
    %c0_1 = arith.constant 0 : index
    %c0_2 = arith.constant 0 : index
    %1 = vector.load %arg2[%c0_1, %c0_2] : memref<32x128xf32, #tpu.memory_space<vmem>>, vector<32x128xf32>
    %cst = arith.constant dense<0.000000e+00> : vector<8x128xf32>
    %2 = tpu.matmul %0, %1, %cst {dimension_numbers = #tpu.dot_dimension_numbers<[1], [0], [0], [1], [0, 0, 1, 1], [], []>} : vector<8x32xf32>, vector<32x128xf32>, vector<8x128xf32> -> vector<8x128xf32>
    %c0_3 = arith.constant 0 : index
    %c0_4 = arith.constant 0 : index
    %3 = vector.load %arg3[%c0_3, %c0_4] : memref<1x128xf32, #tpu.memory_space<vmem>>, vector<1x128xf32>
    %4 = vector.broadcast %3 : vector<1x128xf32> to vector<8x128xf32>
    %5 = arith.addf %2, %4 : vector<8x128xf32>
    %6 = math.tanh %5 : vector<8x128xf32>
    %c0_5 = arith.constant 0 : index
    %c0_6 = arith.constant 0 : index
    %7 = vector.load %arg4[%c0_5, %c0_6] : memref<128x128xf32, #tpu.memory_space<vmem>>, vector<128x128xf32>
    %cst_7 = arith.constant dense<0.000000e+00> : vector<8x128xf32>
    %8 = tpu.matmul %6, %7, %cst_7 {dimension_numbers = #tpu.dot_dimension_numbers<[1], [0], [0], [1], [0, 0, 1, 1], [], []>} : vector<8x128xf32>, vector<128x128xf32>, vector<8x128xf32> -> vector<8x128xf32>
    %c0_8 = arith.constant 0 : index
    %c0_9 = arith.constant 0 : index
    %9 = vector.load %arg5[%c0_8, %c0_9] : memref<1x128xf32, #tpu.memory_space<vmem>>, vector<1x128xf32>
    %10 = vector.broadcast %9 : vector<1x128xf32> to vector<8x128xf32>
    %11 = arith.addf %8, %10 : vector<8x128xf32>
    %12 = arith.negf %11 : vector<8x128xf32>
    %13 = math.exp %12 : vector<8x128xf32>
    %cst_10 = arith.constant 1.000000e+00 : f32
    %14 = vector.broadcast %cst_10 : f32 to vector<8x128xf32>
    %15 = arith.addf %14, %13 : vector<8x128xf32>
    %16 = arith.divf %14, %15 : vector<8x128xf32>
    %c0_11 = arith.constant 0 : index
    %c0_12 = arith.constant 0 : index
    %17 = vector.load %arg6[%c0_11, %c0_12] : memref<128x16xf32, #tpu.memory_space<vmem>>, vector<128x16xf32>
    %cst_13 = arith.constant dense<0.000000e+00> : vector<8x16xf32>
    %18 = tpu.matmul %16, %17, %cst_13 {dimension_numbers = #tpu.dot_dimension_numbers<[1], [0], [0], [1], [0, 0, 1, 1], [], []>} : vector<8x128xf32>, vector<128x16xf32>, vector<8x16xf32> -> vector<8x16xf32>
    %c0_14 = arith.constant 0 : index
    %c0_15 = arith.constant 0 : index
    %19 = vector.load %arg7[%c0_14, %c0_15] : memref<1x16xf32, #tpu.memory_space<vmem>>, vector<1x16xf32>
    %20 = vector.broadcast %19 : vector<1x16xf32> to vector<8x16xf32>
    %21 = arith.addf %18, %20 : vector<8x16xf32>
    %c0_16 = arith.constant 0 : index
    %c0_17 = arith.constant 0 : index
    %22 = vector.load %arg8[%c0_16, %c0_17] : memref<8x16xf32, #tpu.memory_space<vmem>>, vector<8x16xf32>
    tpu.vector_store %arg8[%c0_16, %c0_17], %21 {strides = array<i32>} : memref<8x16xf32, #tpu.memory_space<vmem>>, vector<8x16xf32>,
    return
  }
  func.func @transform_0(%arg0: i32) -> (i32, i32) {
    %c0_i32 = arith.constant 0 : i32
    %c0_i32_0 = arith.constant 0 : i32
    return %arg0, %c0_i32 : i32, i32
  }
  func.func @transform_1(%arg0: i32) -> (i32, i32) {
    %c0_i32 = arith.constant 0 : i32
    %c0_i32_0 = arith.constant 0 : i32
    %c0_i32_1 = arith.constant 0 : i32
    return %c0_i32, %c0_i32_0 : i32, i32
  }
  func.func @transform_2(%arg0: i32) -> (i32, i32) {
    %c0_i32 = arith.constant 0 : i32
    %c0_i32_0 = arith.constant 0 : i32
    %c0_i32_1 = arith.constant 0 : i32
    return %c0_i32, %c0_i32_0 : i32, i32
  }
  func.func @transform_3(%arg0: i32) -> (i32, i32) {
    %c0_i32 = arith.constant 0 : i32
    %c0_i32_0 = arith.constant 0 : i32
    %c0_i32_1 = arith.constant 0 : i32
    return %c0_i32, %c0_i32_0 : i32, i32
  }
  func.func @transform_4(%arg0: i32) -> (i32, i32) {
    %c0_i32 = arith.constant 0 : i32
    %c0_i32_0 = arith.constant 0 : i32
    %c0_i32_1 = arith.constant 0 : i32
    return %c0_i32, %c0_i32_0 : i32, i32
  }
  func.func @transform_5(%arg0: i32) -> (i32, i32) {
    %c0_i32 = arith.constant 0 : i32
    %c0_i32_0 = arith.constant 0 : i32
    %c0_i32_1 = arith.constant 0 : i32
    return %c0_i32, %c0_i32_0 : i32, i32
  }
  func.func @transform_6(%arg0: i32) -> (i32, i32) {
    %c0_i32 = arith.constant 0 : i32
    %c0_i32_0 = arith.constant 0 : i32
    %c0_i32_1 = arith.constant 0 : i32
    return %c0_i32, %c0_i32_0 : i32, i32
  }
  func.func @transform_7(%arg0: i32) -> (i32, i32) {
    %c0_i32 = arith.constant 0 : i32
    %c0_i32_0 = arith.constant 0 : i32
    return %arg0, %c0_i32 : i32, i32
  }
}

</mosaic_0001>

<bundles_post_ra>
// kernel: tpu_custom_call.1
= control target key start
LH: loop header
LB: loop body
LE: loop exit
PB: predicated region body
PF: predicated region fallthrough
CT: control target
= control target key end

     0   :  { %12 = vsyncpa [#allocation3], 0  ;;  %s777_s0 = inlined_call_operand.vmem [shape: f32[8,32], index: 0, kind: input, shape index: {}]   ;;  %s778_s1 = inlined_call_operand.hbm [shape: f32[32,128], index: 1, kind: input, shape index: {}]   ;;  %s779_s2 = inlined_call_operand.vmem [shape: f32[1,128], index: 2, kind: input, shape index: {}]   ;;  %s780_s3 = inlined_call_operand.vmem [shape: f32[128,128], index: 3, kind: input, shape index: {}]   ;;  %s781_s4 = inlined_call_operand.vmem [shape: f32[1,128], index: 4, kind: input, shape index: {}]   ;;  %s782_s5 = inlined_call_operand.vmem [shape: f32[128,16], index: 5, kind: input, shape index: {}]   ;;  %s783_s6 = inlined_call_operand.vmem [shape: f32[1,16], index: 6, kind: input, shape index: {}]   ;;  %s784_s7 = inlined_call_operand.hbm [shape: f32[8,16], index: 7, kind: output, shape index: {}]  }
   0x1   :  { %13 = vsyncpa [#allocation4], 0  ;;  %s577_s24 = smov [#allocation2]   ;;  %s529_s28 = scalar_lea.hbm %s778_s1, 512 }
   0x2   :  { %s21_s25 = sshll.u32 %s577_s24, 4  ;;  %p530_p0 = scmp.ne.s32.totalorder %s778_s1, %s529_s28  ;;  %s22_s25 = int_to_ptr.vmem [resolvable:$true] %s21_s25 }
   0x3   :  { %p533_p1 = scmp.lt.u32.totalorder %s529_s28, %s778_s1 }
   0x5   :  { %p535_p2 = pnand %p533_p1, %p530_p0 }
   0x7   :  { %538 = shalt.err (!%p535_p2)
}
   0x8   :  { %s539_s10 = scalar_lea.vmem %s22_s25, 512  ;;  %p544_p4 = scmp.lt.s32.totalorder %s22_s25, %s22_s25 }
   0x9   :  { %p540_p3 = scmp.ne.s32.totalorder %s22_s25, %s539_s10  ;;  %p545_p5 = scmp.lt.s32.totalorder %s539_s10, %s539_s10 }
   0xb   :  { %p546_p6 = por %p545_p5, %p544_p4 }
   0xd   :  { %p547_p7 = pnand %p546_p6, %p540_p3 }
   0xf   :  { %550 = shalt.err (!%p547_p7)
}
  0x10   :  { %s578_s11 = smov 128   ;;  %s579_s12 = smov 8  }
  0x11   :  { %27 = dma.hbm_to_vmem [thread:$0]  %s778_s1, 512, %s22_s25, [#allocation3], %s578_s11, %s578_s11, %s579_s12  }
  0x12   :  { %573 = dma.done.wait [#allocation3], 512  }
  0x13   :  { %574 = vsyncadd [#allocation3], 4294966784  ;;  %v580_v0 = vmov 0.0|0.0   ;;  %vm581_vm0 = vmmov 0   ;;  %v582_v1 = vmov 0.0   ;;  %v42_v2 = vld [vmem:[#allocation2] sm:$0xff] }
  0x14   :  { %462 = vmatprep.subr.bf16.mxu0 %v580_v0  ;;  %389 = vmatprep.mubr.msk.f32.mxu0 %vm581_vm0, %v582_v1  ;;  %v43_v3 = vld [vmem:[#allocation2 + $0x8] sm:$0xff]  ;;  %v44_v4 = vld [vmem:[#allocation2 + $0x10] sm:$0xff]  ;;  %v45_v6 = vld [vmem:[#allocation2 + $0x18] sm:$0xff]  ;;  %vm53_vm1 = vcmask 261120   ;;  %vm320_vm2 = vcmask 130048  }
  0x15   :  { %468 = vmatprep.subr.bf16.mxu1 %v580_v0  ;;  %424 = vmatprep.mubr.msk.f32.mxu1 %vm581_vm0, %v582_v1  ;;  %v463_v5 = vpack.c.bf16 %v43_v3, %v42_v2  ;;  %v128_v7 = vld [vmem:[%s780_s3] sm:$0xff]  ;;  %v129_v8 = vld [vmem:[%s780_s3 + $0x8] sm:$0xff]  ;;  %v130_v9 = vld [vmem:[%s780_s3 + $0x10] sm:$0xff]  ;;  %v466_v11 = vpack.c.bf16 %v45_v6, %v44_v4 }
  0x16   :  { %v131_v10 = vld [vmem:[%s780_s3 + $0x18] sm:$0xff]  ;;  %v469_v12 = vpack.c.bf16 %v129_v8, %v128_v7  ;;  %v132_v14 = vld [vmem:[%s780_s3 + $0x20] sm:$0xff]  ;;  %v133_v15 = vld [vmem:[%s780_s3 + $0x28] sm:$0xff] }
  0x17   :  { %464 = vmatpush3.bf16.msra.mxu0 %v463_v5  ;;  %v472_v13 = vpack.c.bf16 %v131_v10, %v130_v9  ;;  %v41_v16 = vld [vmem:[%s777_s0] sm:$0xff]  ;;  %v475_v17 = vpack.c.bf16 %v133_v15, %v132_v14  ;;  %v134_v18 = vld [vmem:[%s780_s3 + $0x30] sm:$0xff]  ;;  %v135_v19 = vld [vmem:[%s780_s3 + $0x38] sm:$0xff]  ;;  %s583_s0 = smov [#allocation5]  }
  0x18   :  { %465 = vmatprep.subr.bf16.mxu0 %v580_v0  ;;  %470 = vmatpush3.bf16.msra.mxu1 %v469_v12  ;;  %v478_v20 = vpack.c.bf16 %v135_v19, %v134_v18  ;;  %v136_v21 = vld [vmem:[%s780_s3 + $0x40] sm:$0xff]  ;;  %v137_v22 = vld [vmem:[%s780_s3 + $0x48] sm:$0xff]  ;;  %v138_v24 = vld [vmem:[%s780_s3 + $0x50] sm:$0xff] }
  0x19   :  { %471 = vmatprep.subr.bf16.mxu1 %v580_v0  ;;  %v481_v23 = vpack.c.bf16 %v137_v22, %v136_v21  ;;  %v139_v25 = vld [vmem:[%s780_s3 + $0x58] sm:$0xff]  ;;  %v140_v27 = vld [vmem:[%s780_s3 + $0x60] sm:$0xff]  ;;  %v141_v28 = vld [vmem:[%s780_s3 + $0x68] sm:$0xff] }
  0x1a   :  { %v484_v26 = vpack.c.bf16 %v139_v25, %v138_v24  ;;  %v487_v29 = vpack.c.bf16 %v141_v28, %v140_v27  ;;  %v142_v30 = vld [vmem:[%s780_s3 + $0x70] sm:$0xff]  ;;  %v143_v31 = vld [vmem:[%s780_s3 + $0x78] sm:$0xff]  ;;  %v227_v33 = vld [vmem:[%s782_s5] sm:$0xff] }
  0x1b   :  { %467 = vmatpush3.bf16.msra.mxu0 %v466_v11  ;;  %v490_v32 = vpack.c.bf16 %v143_v31, %v142_v30  ;;  %v228_v34 = vld [vmem:[%s782_s5 + $0x8] sm:$0xff]  ;;  %v337_v36 = vld [vmem:[%s779_s2] ss:$0 sm:$0xff]  ;;  %v229_v41 = vld [vmem:[%s782_s5 + $0x10] sm:$0xff]  ;;  %s328_s2 = sshll.u32 %s583_s0, 4  ;;  %s329_s2 = int_to_ptr.vmem [resolvable:$true] %s328_s2 }
  0x1c   :  { %492 = vmatprep.subr.bf16.mxu0 %v580_v0  ;;  %473 = vmatpush3.bf16.msra.mxu1 %v472_v13  ;;  %v493_v35 = vpack.c.bf16 %v228_v34, %v227_v33  ;;  %v230_v42 = vld [vmem:[%s782_s5 + $0x18] sm:$0xff]  ;;  %v231_v44 = vld [vmem:[%s782_s5 + $0x20] sm:$0xff]  ;;  %v232_v45 = vld [vmem:[%s782_s5 + $0x28] sm:$0xff]  ;;  %p556_p9 = scmp.lt.s32.totalorder %s329_s2, %s329_s2 }
  0x1d   :  { %474 = vmatprep.subr.bf16.mxu1 %v580_v0  ;;  %v496_v43 = vpack.c.bf16 %v230_v42, %v229_v41  ;;  %v499_v46 = vpack.c.bf16 %v232_v45, %v231_v44  ;;  %v233_v47 = vld [vmem:[%s782_s5 + $0x30] sm:$0xff]  ;;  %v234_v48 = vld [vmem:[%s782_s5 + $0x38] sm:$0xff]  ;;  %v235_v50 = vld [vmem:[%s782_s5 + $0x40] sm:$0xff] }
  0x1e   :  { %390 = vmatmul.mubr.msk.f32.vlgmr.msra.gmra.mrb[0].mxu0 %vm53_vm1, %v41_v16  ;;  %v502_v49 = vpack.c.bf16 %v234_v48, %v233_v47  ;;  %v236_v51 = vld [vmem:[%s782_s5 + $0x48] sm:$0xff]  ;;  %v237_v53 = vld [vmem:[%s782_s5 + $0x50] sm:$0xff]  ;;  %v238_v54 = vld [vmem:[%s782_s5 + $0x58] sm:$0xff] }
  0x1f   :  { %459 = vmatprep.mubr.msk.f32.mxu0 %vm581_vm0, %v582_v1  ;;  %494 = vmatpush3.bf16.msra.mxu0 %v493_v35  ;;  %v505_v52 = vpack.c.bf16 %v236_v51, %v235_v50  ;;  %v508_v55 = vpack.c.bf16 %v238_v54, %v237_v53  ;;  %v239_v56 = vld [vmem:[%s782_s5 + $0x60] sm:$0xff]  ;;  %v240_v57 = vld [vmem:[%s782_s5 + $0x68] sm:$0xff]  ;;  %v241_v59 = vld [vmem:[%s782_s5 + $0x70] sm:$0xff] }
  0x20   :  { %476 = vmatpush3.bf16.msra.mxu1 %v475_v17  ;;  %495 = vmatprep.subr.bf16.mxu0 %v580_v0  ;;  %v511_v58 = vpack.c.bf16 %v240_v57, %v239_v56  ;;  %v242_v60 = vld [vmem:[%s782_s5 + $0x78] sm:$0xff]  ;;  %v339_v62 = vld [vmem:[%s781_s4] ss:$0 sm:$0xff]  ;;  %s551_s4 = scalar_lea.vmem %s329_s2, 128 }
  0x21   :  { %477 = vmatprep.subr.bf16.mxu1 %v580_v0  ;;  %v514_v61 = vpack.c.bf16 %v242_v60, %v241_v59  ;;  %v341_v7 = vld [vmem:[%s783_s6] ss:$0 sm:$0xff]  ;;  %p552_p8 = scmp.ne.s32.totalorder %s329_s2, %s551_s4  ;;  %p557_p10 = scmp.lt.s32.totalorder %s551_s4, %s551_s4 }
  0x23   :  { %497 = vmatpush3.bf16.msra.mxu0 %v496_v43  ;;  %p558_p11 = por %p557_p10, %p556_p9 }
  0x24   :  { %479 = vmatpush3.bf16.msra.mxu1 %v478_v20  ;;  %498 = vmatprep.subr.bf16.mxu0 %v580_v0 }
  0x25   :  { %480 = vmatprep.subr.bf16.mxu1 %v580_v0  ;;  %p559_p12 = pnand %p558_p11, %p552_p8 }
  0x27   :  { %500 = vmatpush3.bf16.msra.mxu0 %v499_v46 }
  0x28   :  { %482 = vmatpush3.bf16.msra.mxu1 %v481_v23  ;;  %501 = vmatprep.subr.bf16.mxu0 %v580_v0 }
  0x29   :  { %483 = vmatprep.subr.bf16.mxu1 %v580_v0 }
  0x2b   :  { %503 = vmatpush3.bf16.msra.mxu0 %v502_v49 }
  0x2c   :  { %485 = vmatpush3.bf16.msra.mxu1 %v484_v26  ;;  %504 = vmatprep.subr.bf16.mxu0 %v580_v0 }
  0x2d   :  { %486 = vmatprep.subr.bf16.mxu1 %v580_v0 }
  0x2f   :  { %506 = vmatpush3.bf16.msra.mxu0 %v505_v52 }
  0x30   :  { %488 = vmatpush3.bf16.msra.mxu1 %v487_v29  ;;  %507 = vmatprep.subr.bf16.mxu0 %v580_v0 }
  0x31   :  { %489 = vmatprep.subr.bf16.mxu1 %v580_v0 }
  0x33   :  { %509 = vmatpush3.bf16.msra.mxu0 %v508_v55 }
  0x34   :  { %491 = vmatpush3.bf16.msra.mxu1 %v490_v32  ;;  %510 = vmatprep.subr.bf16.mxu0 %v580_v0 }
  0x37   :  { %512 = vmatpush3.bf16.msra.mxu0 %v511_v58 }
  0x38   :  { %513 = vmatprep.subr.bf16.mxu0 %v580_v0 }
  0x3b   :  { %515 = vmatpush3.bf16.msra.mxu0 %v514_v61 }
  0xf1   :  { %v123_v37 = vpop.f32.mrb[0].mxu0 }
  0xf2   :  { %v124_v38 = vadd.f32 %v337_v36, %v123_v37  ;;  %v391_v39 = vpop.f32.mrb[1].mxu0 }
  0xf4   :  { %523 = vtanh.f32 %v124_v38 }
  0xfe   :  { %v524_v40 = vpop.eup %523 }
  0xff   :  { %425 = vmatmul.mubr.f32.vlgmr.msra.gmra.mrb[0].mxu1 %v524_v40 }
 0x1d2   :  { %v217_v63 = vpop.f32.mrb[0].mxu1 }
 0x1d3   :  { %v218_v1 = vadd.f32 %v339_v62, %v217_v63  ;;  %v426_v2 = vpop.f32.mrb[1].mxu1 }
 0x1d5   :  { %v340_v3 = vmul.f32 -1.442695, %v218_v1 }
 0x1d7   :  { %525 = vpow2.f32 %v340_v3 }
 0x1e1   :  { %v526_v4 = vpop.eup %525 }
 0x1e2   :  { %v224_v5 = vadd.f32 1.0, %v526_v4 }
 0x1e4   :  { %527 = vrcp.f32 %v224_v5 }
 0x1ee   :  { %v528_v6 = vpop.eup %527 }
 0x1ef   :  { %460 = vmatmul.mubr.f32.vlgmr.msra.gmra.mrb[2].mxu0 %v528_v6 }
 0x2c2   :  { %v316_v0 = vpop.f32.mrb[2].mxu0 }
 0x2c3   :  { %v317_v8 = vadd.f32 %v341_v7, %v316_v0  ;;  %v461_v9 = vpop.f32.mrb[3].mxu0 }
 0x2c5   :  { %321 = vst.msk [vmem:[#allocation5] sm:$0xff] %vm320_vm2, %v317_v8 }
 0x2c6   :  { %562 = shalt.err (!%p559_p12)
}
 0x2c7   :  { %s563_s11 = scalar_lea.hbm %s784_s7, 128 }
 0x2c8   :  { %p564_p13 = scmp.ne.s32.totalorder %s784_s7, %s563_s11  ;;  %p567_p0 = scmp.lt.u32.totalorder %s563_s11, %s784_s7 }
 0x2ca   :  { %p569_p1 = pnand %p567_p0, %p564_p13 }
 0x2cc   :  { %572 = shalt.err (!%p569_p1)
}
 0x2cd   :  { %331 = dma.vmem_to_hbm [thread:$0]  %s329_s2, 128, %s784_s7, [#allocation4]  }
 0x2ce   :  { %575 = dma.done.wait [#allocation4], 128  }
 0x2cf   :  { %576 = vsyncadd [#allocation4], 4294967168 }
 0x2d0   :  { %335 = vsyncpa [#allocation3], 1 }
 0x2d1   :  { %336 = vsyncpa [#allocation4], 1 }

</bundles_post_ra>
